<compile_context>
chip_gen: v6e
topology: v6e:2x2x1
jax: 0.10.0
libtpu: 0.0.40
codegen_flags: <defaults>
</compile_context>

<pallas_src>
import functools
import math

import jax
import jax.numpy as jnp
from jax.experimental import pallas as pl
from jax.experimental.pallas import tpu as pltpu

_BN_EPS = 1e-5  # nn.BatchNorm1d default eps (momentum only affects running stats)


# ----------------------------------------------------------------------------
# Pass 1: Conv1d tile via a single C_in*K-contraction matmul + partial BN stats
# ----------------------------------------------------------------------------
def _conv_stats_kernel(x_ref, halo_ref, w_ref, b_ref, y_ref, stat_ref, *, K, pad):
    """One (batch, L-tile) grid step.

    x_ref:    (1, C_in, TL)        input tile (f32 or bf16)
    halo_ref: (1, 1, C_in, 2*pad)  left|right halo columns (zeros at edges)
    w_ref:    (C_out, K*C_in)      weights, tap-major column blocks
    b_ref:    (C_out, 1)           bias (f32)
    y_ref:    (1, C_out, TL)       conv output tile (f32)
    stat_ref: (1, 1, C_out, 2)     per-tile [sum, sum-of-squares] over TL
    """
    x = x_ref[0]                               # (C_in, TL)
    TL = x.shape[-1]
    halo = halo_ref[0, 0] if pad > 0 else None  # (C_in, 2*pad)
    col = jax.lax.broadcasted_iota(jnp.int32, (1, TL), 1)

    # im2col-in-VMEM: K lane-shifted views of the tile (XLU work), with the
    # <= pad wrapped edge columns per tap patched in from the halo strip.
    taps = []
    for k in range(K):
        s = k - pad                            # lane shift of tap k
        t = x if s == 0 else pltpu.roll(x, shift=(-s) % TL, axis=1)
        if s < 0:                              # left edge columns
            for j in range(-s):
                t = jnp.where(col == j, halo[:, j + k][:, None], t)
        elif s > 0:                            # right edge columns
            for m in range(s):
                t = jnp.where(col == TL - s + m, halo[:, pad + m][:, None], t)
        taps.append(t)
    x2 = jnp.concatenate(taps, axis=0) if K > 1 else taps[0]   # (K*C_in, TL)

    # single MXU matmul, K-times-deeper contraction, f32 accumulation.
    acc = jnp.dot(w_ref[...], x2, preferred_element_type=jnp.float32)
    acc = acc + b_ref[...]                     # (C_out, TL) + (C_out, 1)
    y_ref[0] = acc.astype(y_ref.dtype)

    # partial BatchNorm statistics for this tile (reduced on the host: tiny).
    stat_ref[0, 0] = jnp.concatenate(
        [jnp.sum(acc, axis=1, keepdims=True),
         jnp.sum(acc * acc, axis=1, keepdims=True)], axis=1)


# ----------------------------------------------------------------------------
# erf from exp/mul/add/abs/sign (Abramowitz & Stegun 7.1.26, |err| ~ 1.5e-7),
# so the exact (erf-based) nn.GELU() is reproduced to ~f32 precision.  The
# reciprocal runs on the EUP (approx) + one Newton step instead of a VPU divide.
# ----------------------------------------------------------------------------
def _erf_f32(x):
    a1, a2, a3, a4, a5 = (0.254829592, -0.284496736, 1.421413741,
                          -1.453152027, 1.061405429)
    p = 0.3275911
    s = jnp.sign(x)
    ax = jnp.abs(x)
    d = 1.0 + p * ax
    t = pl.reciprocal(d, approx=True)
    t = t * (2.0 - d * t)                      # Newton refinement -> f32 accuracy
    poly = ((((a5 * t + a4) * t + a3) * t + a2) * t + a1) * t
    return s * (1.0 - poly * jnp.exp(-ax * ax))


def _gelu_exact(x):
    return 0.5 * x * (1.0 + _erf_f32(x * (1.0 / math.sqrt(2.0))))


# ----------------------------------------------------------------------------
# Pass 2: folded BatchNorm (scale/shift) + MaxPool1d (floor mode) + GELU,
# streamed over (batch, L-tile) blocks with lane-dense pooled output tiles.
# ----------------------------------------------------------------------------
def _bn_pool_gelu_kernel(y_ref, scale_ref, shift_ref, o_ref, *, pool, activation):
    y = y_ref[0].astype(jnp.float32)           # (C_out, TL)
    y = y * scale_ref[...] + shift_ref[...]    # folded BatchNorm affine
    if pool > 1:
        C = y.shape[0]
        Lo = o_ref.shape[-1]                   # floor-mode pooled width
        # TODO(synk): a lane-strided shifted-max would avoid this relayout; the
        # reshape+max form is kept because it is the proven-lowering path and
        # pool <= 4 makes it cheap relative to the conv matmul.
        y = jnp.max(y[:, :Lo * pool].reshape(C, Lo, pool), axis=-1)
    if activation:
        y = _gelu_exact(y)
    o_ref[0] = y.astype(o_ref.dtype)


# ----------------------------------------------------------------------------
# Host wrapper
# ----------------------------------------------------------------------------
def _choose_l_tile(L, pool):
    """Largest tile whose pooled output width is a lane-dense multiple of 128."""
    for tlo in (512, 384, 256, 128):
        tl = tlo * pool
        if L % tl == 0:
            return tl
    return L            # small / awkward L: one tile per batch element


def _vmem_limit(block_bytes, temp_bytes):
    # double-buffered pipeline blocks + in-kernel temporaries, generous
    # headroom against under-estimation, clamped to v7x's 64 MiB physical VMEM
    # (well under v5e/v6e's 128 MiB).
    need = 2 * block_bytes + temp_bytes
    return int(min(max(2 * need, 32 << 20), 64 << 20))


def conv1d_block(x, w, b, gamma, beta, *, pool_size=1, activation=True,
                 matmul_dtype=jnp.float32):
    """Forward pass of Conv1dBlock.

    x: (N, C_in, L) f32;  w: (C_out, C_in, K);  b/gamma/beta: (C_out,).
    matmul_dtype: jnp.float32 (exact) or jnp.bfloat16 (v6e/v7x MXU peak path;
      accumulation, BatchNorm statistics and GELU always stay in f32).
    """
    N, C_in, L = x.shape
    C_out, C_in_w, K = w.shape
    assert C_in_w == C_in
    assert K % 2 == 1, "only odd ('same'-padding) kernel sizes are supported"
    # TODO(synk): even kernel_size (output length L-1) is not implemented.
    pad = (K - 1) // 2
    pool = pool_size if pool_size is not None and pool_size > 1 else 1
    assert L >= K and L >= pool

    TL = _choose_l_tile(L, pool)               # conv/L tile (lanes)
    nlt = L // TL                              # number of L tiles
    TLO = TL // pool                           # pooled width per tile (floor)
    L_out = nlt * TLO

    isz = jnp.dtype(matmul_dtype).itemsize
    x_in = x.astype(matmul_dtype)
    # tap-major weight slab: W2[:, k*C_in + c] == w[:, c, k]
    w2 = jnp.transpose(w, (0, 2, 1)).reshape(C_out, K * C_in).astype(matmul_dtype)
    b2 = b.reshape(C_out, 1).astype(jnp.float32)

    # tiny per-tile halo strips [left pad cols | right pad cols], zeros at the
    # signal edges; replaces the host-side jnp.pad of the full activation.
    HW = 2 * pad if pad > 0 else 1
    if pad > 0:
        xt = x_in.reshape(N, C_in, nlt, TL)
        z = jnp.zeros((N, C_in, 1, pad), x_in.dtype)
        left = jnp.concatenate([z, xt[:, :, : nlt - 1, TL - pad:]], axis=2)
        right = jnp.concatenate([xt[:, :, 1:, :pad], z], axis=2)
        halo = jnp.transpose(jnp.concatenate([left, right], axis=3), (0, 2, 1, 3))
    else:
        halo = jnp.zeros((N, nlt, C_in, HW), x_in.dtype)

    blk1 = ((C_in * TL + C_in * HW + C_out * K * C_in) * isz
            + C_out * 4 + (C_out * TL + C_out * 2) * 4)
    tmp1 = 2 * K * C_in * TL * isz + C_out * TL * 4
    conv_out, stats = pl.pallas_call(
        functools.partial(_conv_stats_kernel, K=K, pad=pad),
        out_shape=(
            jax.ShapeDtypeStruct((N, C_out, L), jnp.float32),
            jax.ShapeDtypeStruct((N, nlt, C_out, 2), jnp.float32),
        ),
        grid_spec=pltpu.PrefetchScalarGridSpec(
            num_scalar_prefetch=0,
            grid=(N, nlt),
            in_specs=[
                pl.BlockSpec((1, C_in, TL), lambda n, t: (n, 0, t)),
                pl.BlockSpec((1, 1, C_in, HW), lambda n, t: (n, t, 0, 0)),
                pl.BlockSpec((C_out, K * C_in), lambda n, t: (0, 0)),
                pl.BlockSpec((C_out, 1), lambda n, t: (0, 0)),
            ],
            out_specs=[
                pl.BlockSpec((1, C_out, TL), lambda n, t: (n, 0, t)),
                pl.BlockSpec((1, 1, C_out, 2), lambda n, t: (n, t, 0, 0)),
            ],
        ),
        compiler_params=pltpu.CompilerParams(
            dimension_semantics=("parallel", "parallel"),
            vmem_limit_bytes=_vmem_limit(blk1, tmp1)),
    )(x_in, halo, w2, b2)

    # host glue: reduce the tiny partial stats and fold BN into scale + shift.
    cnt = float(N * L)
    s = jnp.sum(stats, axis=(0, 1))                        # (C_out, 2)
    mean = s[:, 0] / cnt
    var = jnp.maximum(s[:, 1] / cnt - mean * mean, 0.0)    # biased batch variance
    inv = jax.lax.rsqrt(var + _BN_EPS)
    g32 = gamma.astype(jnp.float32)
    scale = (g32 * inv).reshape(C_out, 1)
    shift = (beta.astype(jnp.float32) - mean * g32 * inv).reshape(C_out, 1)

    blk2 = C_out * TL * 4 + 2 * C_out * 4 + C_out * TLO * 4
    tmp2 = 4 * C_out * TL * 4
    out = pl.pallas_call(
        functools.partial(_bn_pool_gelu_kernel, pool=pool, activation=activation),
        out_shape=jax.ShapeDtypeStruct((N, C_out, L_out), jnp.float32),
        grid_spec=pltpu.PrefetchScalarGridSpec(
            num_scalar_prefetch=0,
            grid=(N, nlt),
            in_specs=[
                pl.BlockSpec((1, C_out, TL), lambda n, t: (n, 0, t)),
                pl.BlockSpec((C_out, 1), lambda n, t: (0, 0)),
                pl.BlockSpec((C_out, 1), lambda n, t: (0, 0)),
            ],
            out_specs=pl.BlockSpec((1, C_out, TLO), lambda n, t: (n, 0, t)),
        ),
        compiler_params=pltpu.CompilerParams(
            dimension_semantics=("parallel", "parallel"),
            vmem_limit_bytes=_vmem_limit(blk2, tmp2)),
    )(conv_out, scale, shift)
    return out


# ----------------------------------------------------------------------------
# Pure-JAX reference (same semantics as the PyTorch module's forward()).
# ----------------------------------------------------------------------------
def _reference(x, w, b, gamma, beta, pool_size, activation):
    K = w.shape[-1]
    pad = (K - 1) // 2
    y = jax.lax.conv_general_dilated(
        x, w, window_strides=(1,), padding=[(pad, pad)],
        dimension_numbers=("NCH", "OIH", "NCH"),
        precision=jax.lax.Precision.HIGHEST)
    y = y + b[None, :, None]
    mean = y.mean(axis=(0, 2), keepdims=True)
    var = ((y - mean) ** 2).mean(axis=(0, 2), keepdims=True)
    y = (y - mean) / jnp.sqrt(var + _BN_EPS)
    y = y * gamma[None, :, None] + beta[None, :, None]
    if pool_size > 1:
        N, C, L = y.shape
        Lo = L // pool_size
        y = y[:, :, :Lo * pool_size].reshape(N, C, Lo, pool_size).max(axis=-1)
    if activation:
        y = 0.5 * y * (1.0 + jax.scipy.special.erf(y / math.sqrt(2.0)))
    return y


if __name__ == "__main__":
    def _make_inputs(key, N, C_in, C_out, L, K):
        kx, kw, kb = jax.random.split(key, 3)
        x = jax.random.normal(kx, (N, C_in, L), jnp.float32)
        bound = 1.0 / math.sqrt(C_in * K)   # PyTorch Conv1d default init range
        w = jax.random.uniform(kw, (C_out, C_in, K), jnp.float32, -bound, bound)
        b = jax.random.uniform(kb, (C_out,), jnp.float32, -bound, bound)
        gamma = jnp.ones((C_out,), jnp.float32)   # BatchNorm1d default affine
        beta = jnp.zeros((C_out,), jnp.float32)
        return x, w, b, gamma, beta

    k1, k2 = jax.random.split(jax.random.PRNGKey(0))

    # 1) small shape (single L tile; halo = zero signal edges), f32 MXU path.
    x, w, b, g, bt = _make_inputs(k1, 2, 4, 8, 16, 3)
    out = jax.block_until_ready(
        conv1d_block(x, w, b, g, bt, pool_size=2, activation=True))
    ref = _reference(x, w, b, g, bt, 2, True)
    assert out.shape == (2, 8, 8), out.shape
    err = float(jnp.max(jnp.abs(out - ref)))
    assert err < 1e-4, f"small f32 path: max abs error {err}"

    # 2) L tiled into the grid (2 tiles of 1024 per batch element): exercises
    #    cross-tile halos, two-pass batch stats, 512-lane pooled output tiles.
    x, w, b, g, bt = _make_inputs(k2, 2, 8, 16, 2048, 5)
    out = jax.block_until_ready(
        conv1d_block(x, w, b, g, bt, pool_size=2, activation=True))
    ref = _reference(x, w, b, g, bt, 2, True)
    assert out.shape == (2, 16, 1024), out.shape
    err = float(jnp.max(jnp.abs(out - ref)))
    assert err < 2e-4, f"tiled f32 path: max abs error {err}"

    # 3) bf16 MXU-input path (v6e/v7x throughput); accumulation, BN stats and
    #    GELU stay in f32, so agreement with the f32 reference is ~1e-2 level.
    out_bf16 = jax.block_until_ready(
        conv1d_block(x, w, b, g, bt, pool_size=2, activation=True,
                     matmul_dtype=jnp.bfloat16))
    err = float(jnp.max(jnp.abs(out_bf16 - ref)))
    assert err < 8e-2, f"bf16 matmul path: max abs error {err}"

    print("KERNEL_OK")
</pallas_src>

<mosaic_0001>
module attributes {stable_mosaic.version = 11 : i64} {
  func.func @_conv_stats_kernel(%arg0: i32, %arg1: i32, %arg2: memref<1x4x16xf32, #tpu.memory_space<vmem>>, %arg3: memref<1x1x4x2xf32, #tpu.memory_space<vmem>>, %arg4: memref<8x12xf32, #tpu.memory_space<vmem>>, %arg5: memref<8x1xf32, #tpu.memory_space<vmem>>, %arg6: memref<1x8x16xf32, #tpu.memory_space<vmem>>, %arg7: memref<1x1x8x2xf32, #tpu.memory_space<vmem>>) attributes {dimension_semantics = [#tpu.dimension_semantics<parallel>, #tpu.dimension_semantics<parallel>], iteration_bounds = array<i64: 2, 1>, scalar_prefetch = 0 : i64, scratch_operands = 0 : i64, tpu.core_type = #tpu.core_type<tc>, window_params = [{transform_indices = @transform_0, window_bounds = array<i64: 1, 4, 16>}, {transform_indices = @transform_1, window_bounds = array<i64: 1, 1, 4, 2>}, {pipeline_mode = #tpu.pipeline_mode<synchronous>, transform_indices = @transform_2, window_bounds = array<i64: 8, 12>}, {pipeline_mode = #tpu.pipeline_mode<synchronous>, transform_indices = @transform_3, window_bounds = array<i64: 8, 1>}, {transform_indices = @transform_4, window_bounds = array<i64: 1, 8, 16>}, {transform_indices = @transform_5, window_bounds = array<i64: 1, 1, 8, 2>}]} {
    %c0 = arith.constant 0 : index
    %c0_0 = arith.constant 0 : index
    %c0_1 = arith.constant 0 : index
    %0 = vector.load %arg2[%c0, %c0_0, %c0_1] : memref<1x4x16xf32, #tpu.memory_space<vmem>>, vector<1x4x16xf32>
    %1 = vector.shape_cast %0 : vector<1x4x16xf32> to vector<4x16xf32>
    %c0_2 = arith.constant 0 : index
    %c0_3 = arith.constant 0 : index
    %c0_4 = arith.constant 0 : index
    %c0_5 = arith.constant 0 : index
    %2 = vector.load %arg3[%c0_2, %c0_3, %c0_4, %c0_5] : memref<1x1x4x2xf32, #tpu.memory_space<vmem>>, vector<1x1x4x2xf32>
    %3 = vector.shape_cast %2 : vector<1x1x4x2xf32> to vector<4x2xf32>
    %4 = tpu.iota {dimensions = array<i32: 1>} : vector<1x16xi32>
    %c1_i32 = arith.constant 1 : i32
    %5 = tpu.dynamic_rotate %1 by %c1_i32 dim 1 : vector<4x16xf32>, i32 -> vector<4x16xf32>
    %c0_i32 = arith.constant 0 : i32
    %6 = vector.broadcast %c0_i32 : i32 to vector<1x16xi32>
    %7 = arith.cmpi eq, %4, %6 : vector<1x16xi32>
    %8 = vector.extract_strided_slice %3 {offsets = [0, 0], sizes = [4, 1], strides = [1, 1]} : vector<4x2xf32> to vector<4x1xf32>
    %9 = vector.shape_cast %8 : vector<4x1xf32> to vector<4xf32>
    %10 = vector.shape_cast %9 : vector<4xf32> to vector<4x1xf32>
    %11 = vector.shape_cast %7 : vector<1x16xi1> to vector<1x16xi1>
    %12 = vector.broadcast %11 : vector<1x16xi1> to vector<4x16xi1>
    %13 = vector.shape_cast %10 : vector<4x1xf32> to vector<4x1xf32>
    %14 = vector.broadcast %13 : vector<4x1xf32> to vector<4x16xf32>
    %15 = arith.select %12, %14, %5 : vector<4x16xi1>, vector<4x16xf32>
    %c15_i32 = arith.constant 15 : i32
    %16 = tpu.dynamic_rotate %1 by %c15_i32 dim 1 : vector<4x16xf32>, i32 -> vector<4x16xf32>
    %c15_i32_6 = arith.constant 15 : i32
    %17 = vector.broadcast %c15_i32_6 : i32 to vector<1x16xi32>
    %18 = arith.cmpi eq, %4, %17 : vector<1x16xi32>
    %19 = vector.extract_strided_slice %3 {offsets = [0, 1], sizes = [4, 1], strides = [1, 1]} : vector<4x2xf32> to vector<4x1xf32>
    %20 = vector.shape_cast %19 : vector<4x1xf32> to vector<4xf32>
    %21 = vector.shape_cast %20 : vector<4xf32> to vector<4x1xf32>
    %22 = vector.shape_cast %18 : vector<1x16xi1> to vector<1x16xi1>
    %23 = vector.broadcast %22 : vector<1x16xi1> to vector<4x16xi1>
    %24 = vector.shape_cast %21 : vector<4x1xf32> to vector<4x1xf32>
    %25 = vector.broadcast %24 : vector<4x1xf32> to vector<4x16xf32>
    %26 = arith.select %23, %25, %16 : vector<4x16xi1>, vector<4x16xf32>
    %27 = tpu.concatenate %15, %1, %26 in 0 : vector<4x16xf32>, vector<4x16xf32>, vector<4x16xf32> -> vector<12x16xf32>
    %c0_7 = arith.constant 0 : index
    %c0_8 = arith.constant 0 : index
    %28 = vector.load %arg4[%c0_7, %c0_8] : memref<8x12xf32, #tpu.memory_space<vmem>>, vector<8x12xf32>
    %cst = arith.constant dense<0.000000e+00> : vector<8x16xf32>
    %29 = tpu.matmul %28, %27, %cst {dimension_numbers = #tpu.dot_dimension_numbers<[1], [0], [0], [1], [0, 0, 1, 1], [], []>} : vector<8x12xf32>, vector<12x16xf32>, vector<8x16xf32> -> vector<8x16xf32>
    %c0_9 = arith.constant 0 : index
    %c0_10 = arith.constant 0 : index
    %30 = vector.load %arg5[%c0_9, %c0_10] : memref<8x1xf32, #tpu.memory_space<vmem>>, vector<8x1xf32>
    %31 = vector.broadcast %30 : vector<8x1xf32> to vector<8x16xf32>
    %32 = arith.addf %29, %31 : vector<8x16xf32>
    %c0_11 = arith.constant 0 : index
    %c0_12 = arith.constant 0 : index
    %c0_13 = arith.constant 0 : index
    %33 = vector.load %arg6[%c0_11, %c0_12, %c0_13] : memref<1x8x16xf32, #tpu.memory_space<vmem>>, vector<1x8x16xf32>
    %34 = vector.shape_cast %33 : vector<1x8x16xf32> to vector<8x16xf32>
    %35 = vector.shape_cast %32 : vector<8x16xf32> to vector<1x8x16xf32>
    tpu.vector_store %arg6[%c0_11, %c0_12, %c0_13], %35 {strides = array<i32>} : memref<1x8x16xf32, #tpu.memory_space<vmem>>, vector<1x8x16xf32>,
    %cst_14 = arith.constant dense<0.000000e+00> : vector<8xf32>
    %36 = vector.multi_reduction <add>, %32, %cst_14 [1] : vector<8x16xf32> to vector<8xf32>
    %37 = vector.shape_cast %36 : vector<8xf32> to vector<8x1xf32>
    %38 = arith.mulf %32, %32 : vector<8x16xf32>
    %cst_15 = arith.constant dense<0.000000e+00> : vector<8xf32>
    %39 = vector.multi_reduction <add>, %38, %cst_15 [1] : vector<8x16xf32> to vector<8xf32>
    %40 = vector.shape_cast %39 : vector<8xf32> to vector<8x1xf32>
    %41 = tpu.concatenate %37, %40 in 1 : vector<8x1xf32>, vector<8x1xf32> -> vector<8x2xf32>
    %c0_16 = arith.constant 0 : index
    %c0_17 = arith.constant 0 : index
    %c0_18 = arith.constant 0 : index
    %c0_19 = arith.constant 0 : index
    %42 = vector.load %arg7[%c0_16, %c0_17, %c0_18, %c0_19] : memref<1x1x8x2xf32, #tpu.memory_space<vmem>>, vector<1x1x8x2xf32>
    %43 = vector.shape_cast %42 : vector<1x1x8x2xf32> to vector<8x2xf32>
    %44 = vector.shape_cast %41 : vector<8x2xf32> to vector<1x1x8x2xf32>
    tpu.vector_store %arg7[%c0_16, %c0_17, %c0_18, %c0_19], %44 {strides = array<i32>} : memref<1x1x8x2xf32, #tpu.memory_space<vmem>>, vector<1x1x8x2xf32>,
    return
  }
  func.func @transform_0(%arg0: i32, %arg1: i32) -> (i32, i32, i32) {
    %c0_i32 = arith.constant 0 : i32
    %c0_i32_0 = arith.constant 0 : i32
    return %arg0, %c0_i32, %arg1 : i32, i32, i32
  }
  func.func @transform_1(%arg0: i32, %arg1: i32) -> (i32, i32, i32, i32) {
    %c0_i32 = arith.constant 0 : i32
    %c0_i32_0 = arith.constant 0 : i32
    %c0_i32_1 = arith.constant 0 : i32
    return %arg0, %arg1, %c0_i32, %c0_i32_0 : i32, i32, i32, i32
  }
  func.func @transform_2(%arg0: i32, %arg1: i32) -> (i32, i32) {
    %c0_i32 = arith.constant 0 : i32
    %c0_i32_0 = arith.constant 0 : i32
    %c0_i32_1 = arith.constant 0 : i32
    return %c0_i32, %c0_i32_0 : i32, i32
  }
  func.func @transform_3(%arg0: i32, %arg1: i32) -> (i32, i32) {
    %c0_i32 = arith.constant 0 : i32
    %c0_i32_0 = arith.constant 0 : i32
    %c0_i32_1 = arith.constant 0 : i32
    return %c0_i32, %c0_i32_0 : i32, i32
  }
  func.func @transform_4(%arg0: i32, %arg1: i32) -> (i32, i32, i32) {
    %c0_i32 = arith.constant 0 : i32
    %c0_i32_0 = arith.constant 0 : i32
    return %arg0, %c0_i32, %arg1 : i32, i32, i32
  }
  func.func @transform_5(%arg0: i32, %arg1: i32) -> (i32, i32, i32, i32) {
    %c0_i32 = arith.constant 0 : i32
    %c0_i32_0 = arith.constant 0 : i32
    %c0_i32_1 = arith.constant 0 : i32
    return %arg0, %arg1, %c0_i32, %c0_i32_0 : i32, i32, i32, i32
  }
}

</mosaic_0001>

<bundles_post_ra>
// kernel: tpu_custom_call.1
= control target key start
LH: loop header
LB: loop body
LE: loop exit
PB: predicated region body
PF: predicated region fallthrough
CT: control target
= control target key end

     0   :  { %11 = vsyncpa [#allocation3], 0  ;;  %s892_s0 = inlined_call_operand.vmem [shape: f32[2,4,16], index: 0, kind: input, shape index: {}]   ;;  %s893_s1 = inlined_call_operand.vmem [shape: f32[2,1,4,2], index: 1, kind: input, shape index: {}]   ;;  %s894_s2 = inlined_call_operand.vmem [shape: f32[8,12], index: 2, kind: input, shape index: {}]   ;;  %s895_s3 = inlined_call_operand.vmem [shape: f32[8,1], index: 3, kind: input, shape index: {}]   ;;  %s896_s4 = inlined_call_operand.hbm [shape: f32[2,8,16], index: 4, kind: output, shape index: {0}]   ;;  %s897_s5 = inlined_call_operand.vmem [shape: f32[2,1,8,2], index: 5, kind: output, shape index: {1}]  }
   0x1   :  { %13 = vsyncpa [#allocation3 + $0x1], 0  ;;  %s777_s18 = smov 0   ;;  %s779_s19 = smov 0  }
   0x2   :  { %s781_s20 = smov 0   ;;  %s783_s21 = smov 0  }
   0x3   :  { %s785_s22 = smov 0   ;;  %s787_s23 = smov 0  }
   0x4 LB: > { %s571_s24 = sadd.s32 4294967295, %s737_s23   ;;  %s572_s25 = sadd.s32 4294967294, %s737_s23   ;;  %s737_s23 = sphi %s787_s23, %s19_s23   ;;  %s733_s22 = sphi %s785_s22, %s904_s22   ;;  %s729_s21 = sphi %s783_s21, %s903_s21   ;;  %s725_s20 = sphi %s781_s20, %s902_s20   ;;  %s721_s19 = sphi %s779_s19, %s901_s19   ;;  %s717_s18 = sphi %s777_s18, %s900_s18  }
   0x5   : > { %s31_s26 = sadd.s32 1, %s733_s22  ;;  %s138_s27 = sadd.s32 1, %s725_s20 }
   0x6   : > { %p33_p0 = scmp.ge.s32.totalorder %s31_s26, 2  ;;  %p148_p1 = scmp.ne.s32.totalorder %s725_s20, %s721_s19 }
   0x7   : > { %p149_p2 = scmp.eq.s32.totalorder %s571_s24, 1  ;;  %p154_p3 = scmp.ne.s32.totalorder %s721_s19, %s717_s18 }
   0x8   : > { %s906_s26 = smov (%p33_p0, %s31_s26), 0  ;;  %p155_p5 = scmp.eq.s32.totalorder %s572_s25, 1 }
   0x9   : > { %p817_p4 = por %p149_p2, %p148_p1  ;;  %s133_s29 = ssub.s32 %s733_s22, %s906_s26 }
   0xa   : > { %p575_p6 = scmp.ge.s32.totalorder %s737_s23, 1  ;;  %p136_p7 = scmp.eq.s32.totalorder %s133_s29, 0 }
   0xb   : > { %p824_p8 = por %p155_p5, %p154_p3  ;;  %p227_p9 = scmp.lt.s32.totalorder %s737_s23, 3 }
   0xc   : > { %s830_s6 = scalar_select %p136_p7, %s725_s20, %s138_s27  }
   0xd   : > { %p228_p10 = pnand %p575_p6, %p227_p9 }
   0xe   : > { %p271_p11 = scmp.lt.s32.totalorder (!%p228_p10), %s729_s21, 1  ;;  %s741_s15 = smov (!%p228_p10), 16  }
   0xf   : > { %231 = sbr.rel (%p228_p10) target bundleno = 714 (0x2ca), region = 36  ;;  %s744_s16 = smov (!%p228_p10), 113  }
  0x10   : > { %s745_s17 = smov (!%p228_p10), 127   ;;  %s746_s24 = smov (!%p228_p10), [#allocation2]  }
  0x11   : > { %s665_s25 = sshll.u32 (!%p228_p10), %s746_s24, 4  ;;  %s666_s25 = int_to_ptr.vmem [resolvable:$false] %s665_s25 }
  0x12   : > { %s667_s27 = scalar_lea.vmem (!%p228_p10), %s666_s25, 256 }
  0x14   : > { %v739_v0 = vmov 1   ;;  %v740_v1 = vmov 0   ;;  %s834_s7 = scalar_select %p271_p11, %s729_s21, 1  ;;  %vm296_vm0 = vcmask 1047680   ;;  %v742_v6 = vmov 0.0   ;;  %v333_v9 = vld [vmem:[%s895_s3] sm:$0xff] }
  0x15   : > { %658 = vset.pattern.permute.xlu1 %v739_v0  ;;  %660 = vset.pattern.permute.xlu0 %v740_v1  ;;  %vm743_vm1 = vmmov 0   ;;  %v294_v11 = vlaneseq  ;;  %vm330_vm4 = vcmask 1043456   ;;  %v332_v20 = vld [vmem:[%s894_s2] sm:$0xff]  ;;  %vm339_vm5 = vcmask 97280  }
  0x16   : > { %s577_s8 = sshll.u32 %s834_s7, 2  ;;  %589 = vmatprep.subr.mxu0 %v742_v6  ;;  %593 = vmatprep.mubr.msk.f32.mxu0 %vm743_vm1, %v742_v6  ;;  %vm416_vm6 = vcmask 130048  }
  0x17   : > { %s277_s11 = scalar_lea.vmem %s892_s0, %s577_s8  ;;  %s284_s14 = scalar_lea.vmem %s893_s1, %s577_s8  ;;  %v295_v13 = vand.u32 127, %v294_v11 }
  0x18   : > { %v292_v2 = vld [vmem:[%s277_s11] sm:$0xf]  ;;  %s259_s8 = sand.u32 1, %s721_s19   ;;  %s583_s11 = sshll.u32 %s729_s21, 7 }
  0x19   : > { %v293_v3 = vld [vmem:[%s284_s14] sm:$0xf]  ;;  %297 = vrot.lane.b32.xlu0 %v292_v2, %s741_s15  ;;  %vm303_vm2 = vcmp.eq.s32.totalorder %v295_v13, 0  ;;  %vm316_vm3 = vcmp.eq.s32.totalorder %v295_v13, 15  ;;  %v328_v14 = vrot.slane %v292_v2, 4  ;;  %s576_s9 = sshll.u32 %s259_s8, 3 }
  0x1a   : > { %320 = vperm.xlu1 %658, %v293_v3   ;;  %s261_s10 = scalar_lea.vmem [#allocation2], %s576_s9 }
  0x1b   : > { %s451_s12 = sshll.u32 %s261_s10, 4  ;;  %s452_s12 = int_to_ptr.vmem [resolvable:$true] %s451_s12 }
  0x1c   : > { %p668_p1 = scmp.lt.s32.totalorder %s452_s12, %s666_s25 }
  0x1e   : > { %659 = vset.pattern.permute.xlu1 %v740_v1 }
  0x1f   : > { %308 = vperm.xlu1 %659, %v293_v3  }
  0x8b   : > { %v298_v4 = vpop.permute.xlu0 %297 }
  0x8c   : > { %v299_v5 = vsel %vm296_vm0, %v298_v4, %v292_v2 }
  0x8d   : > { %300 = vrot.lane.b32.xlu0 %v299_v5, %s741_s15  ;;  %s449_s15 = scalar_lea.hbm %s896_s4, %s583_s11 }
  0x95   : > { %v321_v10 = vpop.permute.xlu1 %320 }
  0x9a   : > { %v309_v12 = vpop.permute.xlu1 %308 }
  0xff   : > { %v301_v7 = vpop.permute.xlu0 %300 }
 0x100   : > { %v302_v8 = vsel %vm296_vm0, %v301_v7, %v292_v2 }
 0x101   : > { %312 = vrot.lane.b32.xlu1 %v302_v8, %s744_s16  ;;  %323 = vrot.lane.b32.xlu0 %v302_v8, %s745_s17  ;;  %s430_s16 = scalar_lea.sflag [#allocation3], %s259_s8  ;;  %s661_s17 = scalar_lea.vmem %s452_s12, 128 }
 0x102   : > { %p662_p12 = scmp.ne.s32.totalorder %s452_s12, %s661_s17  ;;  %p669_p2 = scmp.lt.s32.totalorder %s667_s27, %s661_s17 }
 0x104   : > { %p663_p13 = pnand %p662_p12, %p817_p4  ;;  %p670_p3 = por %p669_p2, %p668_p1 }
 0x105   : > { %336 = vperm.xlu0 %660, %v333_v9  }
 0x106   : > { %p664_p0 = pneg %p663_p13 }
 0x108   : > { %p671_p5 = pnand %p670_p3, %p664_p0 }
 0x173   : > { %v313_v15 = vpop.permute.xlu1 %312  ;;  %v324_v16 = vpop.permute.xlu0 %323 }
 0x174   : > { %v315_v17 = vsel %vm303_vm2, %v309_v12, %v313_v15  ;;  %v326_v18 = vsel %vm316_vm3, %v321_v10, %v324_v16 }
 0x175   : > { %590 = vmatpush3.msk.msra.mxu0 %vm330_vm4, %v326_v18  ;;  %v331_v19 = vsel %vm330_vm4, %v315_v17, %v328_v14 }
 0x176   : > { %591 = vmatprep.subr.mxu0 %v742_v6 }
 0x177   : > { %592 = vmatpush3.msra.mxu0 %v331_v19 }
 0x178   : > { %594 = vmatmul.mubr.msk.f32.vlgmr.msra.gmra.mxu0 %vm339_vm5, %v332_v20 }
 0x180   : > { %v337_v21 = vpop.permute.xlu0 %336 }
 0x238   : > { %v412_v22 = vpop.f32.mrf.mxu0 }
 0x239   : > { %v413_v23 = vadd.f32 %v412_v22, %v337_v21 }
 0x23a   : > { %v595_v24 = vpop.f32.mrf.mxu0 }
 0x23b   : > { %v418_v25 = vsel %vm416_vm6, %v413_v23, 0.0  ;;  %v421_v26 = vmul.f32 %v413_v23, %v413_v23  ;;  %417 = vst.msk [vmem:[%s261_s10] sm:$0xff] %vm416_vm6, %v413_v23 }
 0x23c   : > { %419 = vadd.xlane.f32.xlu1 %v418_v25 }
 0x23d   : > { %v422_v27 = vsel %vm416_vm6, %v421_v26, 0.0 }
 0x23e   : > { %423 = vadd.xlane.f32.xlu0 %v422_v27 }
 0x23f   : > { %674 = shalt.err (!%p671_p5)
}
 0x240   : > { %s675_s21 = scalar_lea.hbm %s449_s15, 128  ;;  %s679_s9 = scalar_lea.hbm %s896_s4, 256 }
 0x241   : > { %p676_p6 = scmp.ne.s32.totalorder %s449_s15, %s675_s21  ;;  %p680_p10 = scmp.lt.s32.totalorder %s449_s15, %s896_s4 }
 0x242   : > { %p681_p11 = scmp.lt.s32.totalorder %s679_s9, %s675_s21 }
 0x243   : > { %p677_p7 = pnand %p676_p6, %p817_p4 }
 0x244   : > { %p682_p12 = por %p681_p11, %p680_p10 }
 0x245   : > { %p678_p9 = pneg %p677_p7 }
 0x247   : > { %p683_p13 = pnand %p682_p12, %p678_p9 }
 0x249   : > { %686 = shalt.err (!%p683_p13)
}
 0x24a   : > { %596 = dma.vmem_to_hbm [thread:$0]  (%p817_p4), %s452_s12, 128, %s449_s15, %s430_s16   ;;  %vm425_vm7 = vcmask 7168   ;;  %vm427_vm8 = vcmask 15360  }
 0x24b   : > { %s579_s13 = sshll.u32 %s834_s7, 3 }
 0x24c   : > { %s291_s24 = scalar_lea.vmem %s897_s5, %s579_s13 }
 0x2c5   : > { %v420_v28 = vpop.xlane.xlu1 %419 }
 0x2c7   : > { %v424_v29 = vpop.xlane.xlu0 %423 }
 0x2c8   : > { %v426_v30 = vsel %vm425_vm7, %v420_v28, %v424_v29 }
 0x2c9   : > { %428 = vst.msk [vmem:[%s291_s24] sm:$0xff] %vm427_vm8, %v426_v30 }
 0x2ca PF: > { %p602_p0 = scmp.ge.s32.totalorder %s737_s23, 2  ;;  %s466_s25 = sand.u32 1, %s717_s18  }
 0x2cb   : > { %s467_s28 = scalar_lea.sflag [#allocation3], %s466_s25 }
 0x2cc   : > { %p599_p1 = pnand %p602_p0, %p824_p8 }
 0x2ce   : > { %p600_p4 = pneg %p599_p1 }
 0x2d0   : > { %712 = dma.done.wait (%p600_p4), %s467_s28, 128  }
 0x2d1   : > { %714 = vsyncadd (%p600_p4), %s467_s28, 4294967168  ;;  %s19_s23 = sadd.s32 1, %s737_s23   ;;  %s900_s18 = smov %s721_s19 }
 0x2d2   : > { %p16_p2 = scmp.ge.s32.totalorder %s19_s23, 4   ;;  %s901_s19 = smov %s725_s20 }
 0x2d3   : > { %s902_s20 = smov %s830_s6  ;;  %s903_s21 = smov %s733_s22 }
 0x2d4   : > { %s904_s22 = smov %s906_s26  ;;  %18 = sbr.rel (!%p16_p2) target bundleno = 4 (0x4), region = 86 }
 0x2d9   :  { %482 = vsyncpa [#allocation3], 1 }
 0x2da   :  { %484 = vsyncpa [#allocation3 + $0x1], 1 }

</bundles_post_ra>
